<compile_context>
chip_gen: v7x
topology: tpu7x:2x2x1
jax: 0.10.0
libtpu: 0.0.40
codegen_flags: <defaults>
</compile_context>

<pallas_src>
import math

import jax
import jax.numpy as jnp
import numpy as np
from jax.experimental import pallas as pl
from jax.experimental.pallas import tpu as pltpu


def _make_vit_layer_kernel(num_heads: int, head_dim: int, bt: int, n: int,
                           e: int, hdim: int, n_ff_chunks: int):
    """Build the per-batch-tile kernel (closure over static shape config)."""
    scale = 1.0 / math.sqrt(head_dim)
    inv_sqrt2 = 1.0 / math.sqrt(2.0)
    rows = bt * n

    # Heads are grouped so each group spans ~128 lanes (head_dim=64 -> pairs).
    hg = min(num_heads, max(1, 128 // head_dim)) if head_dim < 128 else 1
    while num_heads % hg:
        hg -= 1
    gw = hg * head_dim
    n_groups = num_heads // hg
    hc = hdim // n_ff_chunks

    def kernel(x_ref,                 # (Bt, N, E)
               g1_ref, b1_ref,        # (1, E) LayerNorm 1
               wqkv_ref,              # (E, 3E)  bf16 (pre-transposed)
               wproj_ref, bproj_ref,  # (E, E) bf16, (1, E) f32
               g2_ref, b2_ref,        # (1, E) LayerNorm 2
               w1_ref, bb1_ref,       # (E, H) bf16, (1, H) f32
               w2_ref, bb2_ref,       # (H, E) bf16, (1, E) f32
               o_ref,                 # (Bt, N, E)
               attn_scr):             # VMEM (Bt*N, E) bf16 scratch
        # Merge (Bt, N) -> rows so every dense matmul sees a tall M dim.
        x = x_ref[...].reshape(rows, e).astype(jnp.float32)

        def layernorm(h, g, b):
            mu = jnp.mean(h, axis=-1, keepdims=True)
            var = jnp.mean((h - mu) ** 2, axis=-1, keepdims=True)
            return (h - mu) * jax.lax.rsqrt(var + 1e-5) * g + b

        # ---- attention block (pre-norm) ----
        h = layernorm(x, g1_ref[...], b1_ref[...]).astype(jnp.bfloat16)

        # TODO(synk): process the hg heads of a group in one batched einsum
        # ('bnhd,bmhd->bhnm') once Mosaic supports multi-batch-dim dot_general;
        # for now heads inside a group are unrolled but loads/stores stay
        # lane-aligned / lane-dense at group (128-lane) granularity.
        for g in range(n_groups):
            c0 = g * gw
            # Per-group QKV projections against static lane-aligned slices of
            # the resident weight ref; each slab is cast to bf16 exactly once.
            qs = jnp.dot(h, wqkv_ref[:, c0:c0 + gw],
                         preferred_element_type=jnp.float32).astype(jnp.bfloat16)
            ks = jnp.dot(h, wqkv_ref[:, e + c0:e + c0 + gw],
                         preferred_element_type=jnp.float32).astype(jnp.bfloat16)
            vs = jnp.dot(h, wqkv_ref[:, 2 * e + c0:2 * e + c0 + gw],
                         preferred_element_type=jnp.float32).astype(jnp.bfloat16)

            ohs = []
            for j in range(hg):
                d0 = j * head_dim
                qh = qs[:, d0:d0 + head_dim].reshape(bt, n, head_dim)
                kh = ks[:, d0:d0 + head_dim].reshape(bt, n, head_dim)
                vh = vs[:, d0:d0 + head_dim].reshape(bt, n, head_dim)

                s = jnp.einsum("bnd,bmd->bnm", qh, kh,
                               preferred_element_type=jnp.float32) * scale
                s = s - jnp.max(s, axis=-1, keepdims=True)
                p = jnp.exp(s)
                p = p * pl.reciprocal(jnp.sum(p, axis=-1, keepdims=True),
                                      approx=True)
                oh = jnp.einsum("bnm,bmd->bnd", p.astype(jnp.bfloat16), vh,
                                preferred_element_type=jnp.float32)
                ohs.append(oh.reshape(rows, head_dim))

            slab = ohs[0] if hg == 1 else jnp.concatenate(ohs, axis=-1)
            # Lane-dense (gw-wide, typically 128) store into bf16 scratch.
            attn_scr[:, c0:c0 + gw] = slab.astype(jnp.bfloat16)

        attn = jnp.dot(attn_scr[...], wproj_ref[...],
                       preferred_element_type=jnp.float32) + bproj_ref[...]
        # attn_dropout / proj_dropout: p=0 in eval -> identity
        x1 = x + attn

        # ---- feed-forward block (pre-norm), hidden dim chunked so chunk i's
        # erf-GELU (VPU) overlaps chunk i+1's w1 matmul (MXU) ----
        h2 = layernorm(x1, g2_ref[...], b2_ref[...]).astype(jnp.bfloat16)
        ff = jnp.zeros((rows, e), jnp.float32)
        for c in range(n_ff_chunks):
            f0 = c * hc
            f = jnp.dot(h2, w1_ref[:, f0:f0 + hc],
                        preferred_element_type=jnp.float32) + bb1_ref[:, f0:f0 + hc]
            # exact (erf) GELU, matching nn.GELU() default semantics
            f = 0.5 * f * (1.0 + jax.lax.erf(f * inv_sqrt2))
            ff = ff + jnp.dot(f.astype(jnp.bfloat16), w2_ref[f0:f0 + hc, :],
                              preferred_element_type=jnp.float32)
        ff = ff + bb2_ref[...]

        o_ref[...] = (x1 + ff).reshape(bt, n, e).astype(o_ref.dtype)

    return kernel


def _pick_batch_tile(B, N, target_rows=512):
    """Largest divisor of B with Bt*N close to target_rows, keeping >=2 grid steps.

    target_rows=512 amortizes per-grid-step overhead and the serial
    LN/softmax/GELU prologue on v5e/v6e; capping Bt at B//2 keeps at least two
    grid steps so v7x's two TensorCores both get work via the parallel axis.
    """
    want = max(1, -(-target_rows // N))            # ceil(target_rows / N)
    cap = B // 2 if B >= 2 else 1                  # keep grid >= 2 when possible
    limit = max(1, min(want, cap))
    bt = 1
    for cand in range(1, B + 1):
        if B % cand == 0 and cand <= limit:
            bt = cand
    return bt
    # TODO(synk): on v5e pad N inside the tile so rows is a multiple of 128
    # (N=197-style shapes underfill the last 128-deep MXU M pass).


def _pick_mlp_chunks(H):
    """Chunk the MLP hidden dim (chunks >= 256 so the w2 K-dim stays MXU-filled)."""
    for cand in (4, 3, 2):
        if H % cand == 0 and H // cand >= 256:
            return cand
    return 1


def _physical_vmem_bytes():
    try:
        info = pltpu.get_tpu_info()
        v = getattr(info, "vmem_capacity_bytes", None)
        if v:
            return int(v)
    except Exception:
        pass
    return 64 * 1024 * 1024   # conservative: v7x per-TensorCore VMEM


def vit_layer(x, params, num_heads):
    """x: (B, N, E) float32. params: dict (matmul weights pre-transposed, bf16)."""
    B, N, E = x.shape
    H = params["w1_t"].shape[1]
    head_dim = E // num_heads
    Bt = _pick_batch_tile(B, N)
    rows = Bt * N
    n_ff_chunks = _pick_mlp_chunks(H)
    grid = (B // Bt,)
    kernel = _make_vit_layer_kernel(num_heads, head_dim, Bt, N, E, H, n_ff_chunks)

    def resident(shape):
        # Weight / bias blocks: full array, constant block index (resident).
        # Single-buffered: a constant index_map never re-fetches, so the second
        # pipeline buffer would only burn VMEM (critical on v7x's 64 MiB).
        idx = lambda b, _nd=len(shape): (0,) * _nd
        if hasattr(pl, "Buffered"):
            try:
                return pl.BlockSpec(shape, idx, pipeline_mode=pl.Buffered(1))
            except TypeError:
                pass
        return pl.BlockSpec(shape, idx)

    in_specs = [
        pl.BlockSpec((Bt, N, E), lambda b: (b, 0, 0)),   # x tile (pipelined)
        resident((1, E)), resident((1, E)),              # ln1 gamma/beta
        resident((E, 3 * E)),                            # wqkv^T (bf16)
        resident((E, E)), resident((1, E)),              # wproj^T (bf16), bproj
        resident((1, E)), resident((1, E)),              # ln2 gamma/beta
        resident((E, H)), resident((1, H)),              # w1^T (bf16), b1
        resident((H, E)), resident((1, E)),              # w2^T (bf16), b2
    ]

    # VMEM budget from actual buffers + headroom, capped below physical VMEM.
    hg = min(num_heads, max(1, 128 // head_dim)) if head_dim < 128 else 1
    w_bytes = 2 * (3 * E * E + E * E + 2 * E * H)                # bf16 weights (1x)
    vec_bytes = 4 * (6 * E + H) * 2                              # LN params / biases
    io_bytes = 4 * rows * E * 2 * 2                              # x + out tiles, 2x buffered
    scr_bytes = 2 * rows * E                                     # bf16 attn scratch
    act_bytes = 4 * rows * (4 * E + H // n_ff_chunks) + 4 * Bt * N * N * hg
    needed = w_bytes + vec_bytes + io_bytes + scr_bytes + act_bytes
    phys = _physical_vmem_bytes()
    vmem_limit = min(needed + 16 * 1024 * 1024, phys - 8 * 1024 * 1024)
    vmem_limit = int(min(max(vmem_limit, 32 * 1024 * 1024), 100 * 1024 * 1024))

    # Advisory cost estimate for XLA scheduling around the custom call.
    flops = 2 * B * N * (E * 3 * E + E * E + 2 * E * H) + 4 * B * N * N * E
    transcendentals = B * N * (num_heads * N + H)
    weight_bytes = 2 * (3 * E * E + E * E + 2 * E * H)           # bf16 weights
    bytes_accessed = 2 * B * N * E * 4 + weight_bytes + 4 * (6 * E + H)

    # TODO(synk): for ViT-L/H on v7x (64 MiB VMEM), stream wqkv/w1/w2 over an
    # 'arbitrary' reduction grid axis instead of keeping them fully resident.
    # TODO(synk): optional fp8 (e4m3) weight storage + fp8 MXU matmuls on v7x.
    return pl.pallas_call(
        kernel,
        out_shape=jax.ShapeDtypeStruct((B, N, E), x.dtype),
        grid_spec=pltpu.PrefetchScalarGridSpec(
            num_scalar_prefetch=0,
            grid=grid,
            in_specs=in_specs,
            out_specs=pl.BlockSpec((Bt, N, E), lambda b: (b, 0, 0)),
            scratch_shapes=[pltpu.VMEM((rows, E), jnp.bfloat16)],
        ),
        compiler_params=pltpu.CompilerParams(
            dimension_semantics=("parallel",),
            vmem_limit_bytes=vmem_limit),
        cost_estimate=pl.CostEstimate(flops=flops,
                                      transcendentals=transcendentals,
                                      bytes_accessed=bytes_accessed),
    )(x,
      params["ln1_g"], params["ln1_b"],
      params["wqkv_t"],
      params["wproj_t"], params["bproj"],
      params["ln2_g"], params["ln2_b"],
      params["w1_t"], params["b1"],
      params["w2_t"], params["b2"])


def vit_layer_ref(x, params, num_heads):
    """Pure-JAX fp32 reference (same math as the PyTorch module in eval mode)."""
    B, N, E = x.shape
    head_dim = E // num_heads
    wqkv = params["wqkv_t"].astype(jnp.float32)
    wproj = params["wproj_t"].astype(jnp.float32)
    w1 = params["w1_t"].astype(jnp.float32)
    w2 = params["w2_t"].astype(jnp.float32)

    def ln(h, g, b):
        mu = jnp.mean(h, axis=-1, keepdims=True)
        var = jnp.mean((h - mu) ** 2, axis=-1, keepdims=True)
        return (h - mu) * jax.lax.rsqrt(var + 1e-5) * g + b

    h = ln(x, params["ln1_g"], params["ln1_b"])
    qkv = h @ wqkv                                               # (B, N, 3E)
    qkv = qkv.reshape(B, N, 3, num_heads, head_dim)
    qkv = jnp.transpose(qkv, (2, 0, 3, 1, 4))                    # (3, B, h, N, d)
    q, k, v = qkv[0], qkv[1], qkv[2]
    s = jnp.einsum("bhnd,bhmd->bhnm", q, k) / math.sqrt(head_dim)
    p = jax.nn.softmax(s, axis=-1)
    o = jnp.einsum("bhnm,bhmd->bhnd", p, v)
    o = jnp.transpose(o, (0, 2, 1, 3)).reshape(B, N, E)
    o = o @ wproj + params["bproj"]
    x1 = x + o
    h2 = ln(x1, params["ln2_g"], params["ln2_b"])
    ff = h2 @ w1 + params["b1"]
    ff = 0.5 * ff * (1.0 + jax.lax.erf(ff / math.sqrt(2.0)))
    ff = ff @ w2 + params["b2"]
    return x1 + ff


def init_params(key, emb_dim, hidden_dim):
    ks = jax.random.split(key, 6)
    s = 0.05
    return {
        "ln1_g": jnp.ones((1, emb_dim), jnp.float32),
        "ln1_b": jnp.zeros((1, emb_dim), jnp.float32),
        # nn.Linear(emb, 3*emb, bias=False): weight (3E, E); stored transposed, bf16.
        "wqkv_t": (s * jax.random.normal(ks[0], (emb_dim, 3 * emb_dim))).astype(jnp.bfloat16),
        "wproj_t": (s * jax.random.normal(ks[1], (emb_dim, emb_dim))).astype(jnp.bfloat16),
        "bproj": (s * jax.random.normal(ks[2], (1, emb_dim))).astype(jnp.float32),
        "ln2_g": jnp.ones((1, emb_dim), jnp.float32),
        "ln2_b": jnp.zeros((1, emb_dim), jnp.float32),
        "w1_t": (s * jax.random.normal(ks[3], (emb_dim, hidden_dim))).astype(jnp.bfloat16),
        "b1": (s * jax.random.normal(ks[4], (1, hidden_dim))).astype(jnp.float32),
        "w2_t": (s * jax.random.normal(ks[5], (hidden_dim, emb_dim))).astype(jnp.bfloat16),
        "b2": jnp.zeros((1, emb_dim), jnp.float32),
    }


if __name__ == "__main__":
    B, N, E, H, HEADS = 2, 8, 32, 64, 4

    key = jax.random.PRNGKey(0)
    kx, kp = jax.random.split(key)
    x = jax.random.normal(kx, (B, N, E), dtype=jnp.float32)
    params = init_params(kp, E, H)

    out = vit_layer(x, params, HEADS)
    out = jax.block_until_ready(out)

    ref = vit_layer_ref(x, params, HEADS)
    # bf16 matmul inputs + approx reciprocal => relaxed tolerance vs fp32 ref.
    np.testing.assert_allclose(np.asarray(out), np.asarray(ref),
                               atol=2e-2, rtol=2e-2)
    print("KERNEL_OK")
</pallas_src>

<mosaic_0001>
module attributes {stable_mosaic.version = 11 : i64} {
  func.func @kernel(%arg0: i32, %arg1: memref<1x8x32xf32, #tpu.memory_space<vmem>>, %arg2: memref<1x32xf32, #tpu.memory_space<vmem>>, %arg3: memref<1x32xf32, #tpu.memory_space<vmem>>, %arg4: memref<32x96xbf16, #tpu.memory_space<vmem>>, %arg5: memref<32x32xbf16, #tpu.memory_space<vmem>>, %arg6: memref<1x32xf32, #tpu.memory_space<vmem>>, %arg7: memref<1x32xf32, #tpu.memory_space<vmem>>, %arg8: memref<1x32xf32, #tpu.memory_space<vmem>>, %arg9: memref<32x64xbf16, #tpu.memory_space<vmem>>, %arg10: memref<1x64xf32, #tpu.memory_space<vmem>>, %arg11: memref<64x32xbf16, #tpu.memory_space<vmem>>, %arg12: memref<1x32xf32, #tpu.memory_space<vmem>>, %arg13: memref<1x8x32xf32, #tpu.memory_space<vmem>>, %arg14: memref<8x32xbf16, #tpu.memory_space<vmem>>) attributes {dimension_semantics = [#tpu.dimension_semantics<parallel>], iteration_bounds = array<i64: 2>, scalar_prefetch = 0 : i64, scratch_operands = 1 : i64, tpu.core_type = #tpu.core_type<tc>, window_params = [{transform_indices = @transform_0, window_bounds = array<i64: 1, 8, 32>}, {pipeline_mode = #tpu.pipeline_mode<synchronous>, transform_indices = @transform_1, window_bounds = array<i64: 1, 32>}, {pipeline_mode = #tpu.pipeline_mode<synchronous>, transform_indices = @transform_2, window_bounds = array<i64: 1, 32>}, {pipeline_mode = #tpu.pipeline_mode<synchronous>, transform_indices = @transform_3, window_bounds = array<i64: 32, 96>}, {pipeline_mode = #tpu.pipeline_mode<synchronous>, transform_indices = @transform_4, window_bounds = array<i64: 32, 32>}, {pipeline_mode = #tpu.pipeline_mode<synchronous>, transform_indices = @transform_5, window_bounds = array<i64: 1, 32>}, {pipeline_mode = #tpu.pipeline_mode<synchronous>, transform_indices = @transform_6, window_bounds = array<i64: 1, 32>}, {pipeline_mode = #tpu.pipeline_mode<synchronous>, transform_indices = @transform_7, window_bounds = array<i64: 1, 32>}, {pipeline_mode = #tpu.pipeline_mode<synchronous>, transform_indices = @transform_8, window_bounds = array<i64: 32, 64>}, {pipeline_mode = #tpu.pipeline_mode<synchronous>, transform_indices = @transform_9, window_bounds = array<i64: 1, 64>}, {pipeline_mode = #tpu.pipeline_mode<synchronous>, transform_indices = @transform_10, window_bounds = array<i64: 64, 32>}, {pipeline_mode = #tpu.pipeline_mode<synchronous>, transform_indices = @transform_11, window_bounds = array<i64: 1, 32>}, {transform_indices = @transform_12, window_bounds = array<i64: 1, 8, 32>}]} {
    %c0 = arith.constant 0 : index
    %c0_0 = arith.constant 0 : index
    %c0_1 = arith.constant 0 : index
    %0 = vector.load %arg1[%c0, %c0_0, %c0_1] : memref<1x8x32xf32, #tpu.memory_space<vmem>>, vector<1x8x32xf32>
    %1 = vector.shape_cast %0 : vector<1x8x32xf32> to vector<8x32xf32>
    %c0_2 = arith.constant 0 : index
    %c0_3 = arith.constant 0 : index
    %2 = vector.load %arg2[%c0_2, %c0_3] : memref<1x32xf32, #tpu.memory_space<vmem>>, vector<1x32xf32>
    %c0_4 = arith.constant 0 : index
    %c0_5 = arith.constant 0 : index
    %3 = vector.load %arg3[%c0_4, %c0_5] : memref<1x32xf32, #tpu.memory_space<vmem>>, vector<1x32xf32>
    %cst = arith.constant dense<0.000000e+00> : vector<8xf32>
    %4 = vector.multi_reduction <add>, %1, %cst [1] : vector<8x32xf32> to vector<8xf32>
    %5 = vector.shape_cast %4 : vector<8xf32> to vector<8x1xf32>
    %cst_6 = arith.constant 3.200000e+01 : f32
    %6 = vector.broadcast %cst_6 : f32 to vector<8x1xf32>
    %7 = arith.divf %5, %6 : vector<8x1xf32>
    %8 = vector.broadcast %7 : vector<8x1xf32> to vector<8x32xf32>
    %9 = arith.subf %1, %8 : vector<8x32xf32>
    %10 = arith.mulf %9, %9 : vector<8x32xf32>
    %cst_7 = arith.constant dense<0.000000e+00> : vector<8xf32>
    %11 = vector.multi_reduction <add>, %10, %cst_7 [1] : vector<8x32xf32> to vector<8xf32>
    %12 = vector.shape_cast %11 : vector<8xf32> to vector<8x1xf32>
    %cst_8 = arith.constant 3.200000e+01 : f32
    %13 = vector.broadcast %cst_8 : f32 to vector<8x1xf32>
    %14 = arith.divf %12, %13 : vector<8x1xf32>
    %15 = vector.broadcast %7 : vector<8x1xf32> to vector<8x32xf32>
    %16 = arith.subf %1, %15 : vector<8x32xf32>
    %cst_9 = arith.constant 9.99999974E-6 : f32
    %17 = vector.broadcast %cst_9 : f32 to vector<8x1xf32>
    %18 = arith.addf %14, %17 : vector<8x1xf32>
    %19 = math.rsqrt %18 : vector<8x1xf32>
    %20 = vector.broadcast %19 : vector<8x1xf32> to vector<8x32xf32>
    %21 = arith.mulf %16, %20 : vector<8x32xf32>
    %22 = vector.broadcast %2 : vector<1x32xf32> to vector<8x32xf32>
    %23 = arith.mulf %21, %22 : vector<8x32xf32>
    %24 = vector.broadcast %3 : vector<1x32xf32> to vector<8x32xf32>
    %25 = arith.addf %23, %24 : vector<8x32xf32>
    %26 = arith.truncf %25 : vector<8x32xf32> to vector<8x32xbf16>
    %c0_10 = arith.constant 0 : index
    %c0_11 = arith.constant 0 : index
    %27 = vector.load %arg4[%c0_10, %c0_11] : memref<32x96xbf16, #tpu.memory_space<vmem>>, vector<32x32xbf16>
    %cst_12 = arith.constant dense<0.000000e+00> : vector<8x32xf32>
    %28 = tpu.matmul %26, %27, %cst_12 {dimension_numbers = #tpu.dot_dimension_numbers<[1], [0], [0], [1], [0, 0, 1, 1], [], []>} : vector<8x32xbf16>, vector<32x32xbf16>, vector<8x32xf32> -> vector<8x32xf32>
    %29 = arith.truncf %28 : vector<8x32xf32> to vector<8x32xbf16>
    %c0_13 = arith.constant 0 : index
    %c32 = arith.constant 32 : index
    %30 = vector.load %arg4[%c0_13, %c32] : memref<32x96xbf16, #tpu.memory_space<vmem>>, vector<32x32xbf16>
    %cst_14 = arith.constant dense<0.000000e+00> : vector<8x32xf32>
    %31 = tpu.matmul %26, %30, %cst_14 {dimension_numbers = #tpu.dot_dimension_numbers<[1], [0], [0], [1], [0, 0, 1, 1], [], []>} : vector<8x32xbf16>, vector<32x32xbf16>, vector<8x32xf32> -> vector<8x32xf32>
    %32 = arith.truncf %31 : vector<8x32xf32> to vector<8x32xbf16>
    %c0_15 = arith.constant 0 : index
    %c64 = arith.constant 64 : index
    %33 = vector.load %arg4[%c0_15, %c64] : memref<32x96xbf16, #tpu.memory_space<vmem>>, vector<32x32xbf16>
    %cst_16 = arith.constant dense<0.000000e+00> : vector<8x32xf32>
    %34 = tpu.matmul %26, %33, %cst_16 {dimension_numbers = #tpu.dot_dimension_numbers<[1], [0], [0], [1], [0, 0, 1, 1], [], []>} : vector<8x32xbf16>, vector<32x32xbf16>, vector<8x32xf32> -> vector<8x32xf32>
    %35 = arith.truncf %34 : vector<8x32xf32> to vector<8x32xbf16>
    %36 = vector.extract_strided_slice %29 {offsets = [0, 0], sizes = [8, 8], strides = [1, 1]} : vector<8x32xbf16> to vector<8x8xbf16>
    %37 = vector.shape_cast %36 : vector<8x8xbf16> to vector<1x8x8xbf16>
    %38 = vector.extract_strided_slice %32 {offsets = [0, 0], sizes = [8, 8], strides = [1, 1]} : vector<8x32xbf16> to vector<8x8xbf16>
    %39 = vector.shape_cast %38 : vector<8x8xbf16> to vector<1x8x8xbf16>
    %40 = vector.extract_strided_slice %35 {offsets = [0, 0], sizes = [8, 8], strides = [1, 1]} : vector<8x32xbf16> to vector<8x8xbf16>
    %41 = vector.shape_cast %40 : vector<8x8xbf16> to vector<1x8x8xbf16>
    "tpu.trace_start"() <{level = 10 : i32, message = "bnd,bmd->bnm"}> : () -> ()
    %cst_17 = arith.constant dense<0.000000e+00> : vector<1x8x8xf32>
    %42 = tpu.matmul %37, %39, %cst_17 {dimension_numbers = #tpu.dot_dimension_numbers<[2], [2], [1], [1], [0, 0, 0, 1, 1, 1], [0], [0]>} : vector<1x8x8xbf16>, vector<1x8x8xbf16>, vector<1x8x8xf32> -> vector<1x8x8xf32>
    "tpu.trace_stop"() : () -> ()
    %cst_18 = arith.constant 0.353553385 : f32
    %43 = vector.broadcast %cst_18 : f32 to vector<1x8x8xf32>
    %44 = arith.mulf %42, %43 : vector<1x8x8xf32>
    %cst_19 = arith.constant dense<0xFF800000> : vector<1x8xf32>
    %45 = vector.multi_reduction <maximumf>, %44, %cst_19 [2] : vector<1x8x8xf32> to vector<1x8xf32>
    %46 = vector.shape_cast %45 : vector<1x8xf32> to vector<1x8x1xf32>
    %47 = vector.broadcast %46 : vector<1x8x1xf32> to vector<1x8x8xf32>
    %48 = arith.subf %44, %47 : vector<1x8x8xf32>
    %49 = math.exp %48 : vector<1x8x8xf32>
    %cst_20 = arith.constant dense<0.000000e+00> : vector<1x8xf32>
    %50 = vector.multi_reduction <add>, %49, %cst_20 [2] : vector<1x8x8xf32> to vector<1x8xf32>
    %51 = vector.shape_cast %50 : vector<1x8xf32> to vector<1x8x1xf32>
    %52 = tpu.reciprocal %51 {approx = true} : vector<1x8x1xf32> -> vector<1x8x1xf32>
    %53 = vector.broadcast %52 : vector<1x8x1xf32> to vector<1x8x8xf32>
    %54 = arith.mulf %49, %53 : vector<1x8x8xf32>
    %55 = arith.truncf %54 : vector<1x8x8xf32> to vector<1x8x8xbf16>
    "tpu.trace_start"() <{level = 10 : i32, message = "bnm,bmd->bnd"}> : () -> ()
    %cst_21 = arith.constant dense<0.000000e+00> : vector<1x8x8xf32>
    %56 = tpu.matmul %55, %41, %cst_21 {dimension_numbers = #tpu.dot_dimension_numbers<[2], [1], [1], [2], [0, 0, 0, 1, 1, 2], [0], [0]>} : vector<1x8x8xbf16>, vector<1x8x8xbf16>, vector<1x8x8xf32> -> vector<1x8x8xf32>
    "tpu.trace_stop"() : () -> ()
    %57 = vector.shape_cast %56 : vector<1x8x8xf32> to vector<8x8xf32>
    %58 = vector.extract_strided_slice %29 {offsets = [0, 8], sizes = [8, 8], strides = [1, 1]} : vector<8x32xbf16> to vector<8x8xbf16>
    %59 = vector.shape_cast %58 : vector<8x8xbf16> to vector<1x8x8xbf16>
    %60 = vector.extract_strided_slice %32 {offsets = [0, 8], sizes = [8, 8], strides = [1, 1]} : vector<8x32xbf16> to vector<8x8xbf16>
    %61 = vector.shape_cast %60 : vector<8x8xbf16> to vector<1x8x8xbf16>
    %62 = vector.extract_strided_slice %35 {offsets = [0, 8], sizes = [8, 8], strides = [1, 1]} : vector<8x32xbf16> to vector<8x8xbf16>
    %63 = vector.shape_cast %62 : vector<8x8xbf16> to vector<1x8x8xbf16>
    "tpu.trace_start"() <{level = 10 : i32, message = "bnd,bmd->bnm"}> : () -> ()
    %cst_22 = arith.constant dense<0.000000e+00> : vector<1x8x8xf32>
    %64 = tpu.matmul %59, %61, %cst_22 {dimension_numbers = #tpu.dot_dimension_numbers<[2], [2], [1], [1], [0, 0, 0, 1, 1, 1], [0], [0]>} : vector<1x8x8xbf16>, vector<1x8x8xbf16>, vector<1x8x8xf32> -> vector<1x8x8xf32>
    "tpu.trace_stop"() : () -> ()
    %cst_23 = arith.constant 0.353553385 : f32
    %65 = vector.broadcast %cst_23 : f32 to vector<1x8x8xf32>
    %66 = arith.mulf %64, %65 : vector<1x8x8xf32>
    %cst_24 = arith.constant dense<0xFF800000> : vector<1x8xf32>
    %67 = vector.multi_reduction <maximumf>, %66, %cst_24 [2] : vector<1x8x8xf32> to vector<1x8xf32>
    %68 = vector.shape_cast %67 : vector<1x8xf32> to vector<1x8x1xf32>
    %69 = vector.broadcast %68 : vector<1x8x1xf32> to vector<1x8x8xf32>
    %70 = arith.subf %66, %69 : vector<1x8x8xf32>
    %71 = math.exp %70 : vector<1x8x8xf32>
    %cst_25 = arith.constant dense<0.000000e+00> : vector<1x8xf32>
    %72 = vector.multi_reduction <add>, %71, %cst_25 [2] : vector<1x8x8xf32> to vector<1x8xf32>
    %73 = vector.shape_cast %72 : vector<1x8xf32> to vector<1x8x1xf32>
    %74 = tpu.reciprocal %73 {approx = true} : vector<1x8x1xf32> -> vector<1x8x1xf32>
    %75 = vector.broadcast %74 : vector<1x8x1xf32> to vector<1x8x8xf32>
    %76 = arith.mulf %71, %75 : vector<1x8x8xf32>
    %77 = arith.truncf %76 : vector<1x8x8xf32> to vector<1x8x8xbf16>
    "tpu.trace_start"() <{level = 10 : i32, message = "bnm,bmd->bnd"}> : () -> ()
    %cst_26 = arith.constant dense<0.000000e+00> : vector<1x8x8xf32>
    %78 = tpu.matmul %77, %63, %cst_26 {dimension_numbers = #tpu.dot_dimension_numbers<[2], [1], [1], [2], [0, 0, 0, 1, 1, 2], [0], [0]>} : vector<1x8x8xbf16>, vector<1x8x8xbf16>, vector<1x8x8xf32> -> vector<1x8x8xf32>
    "tpu.trace_stop"() : () -> ()
    %79 = vector.shape_cast %78 : vector<1x8x8xf32> to vector<8x8xf32>
    %80 = vector.extract_strided_slice %29 {offsets = [0, 16], sizes = [8, 8], strides = [1, 1]} : vector<8x32xbf16> to vector<8x8xbf16>
    %81 = vector.shape_cast %80 : vector<8x8xbf16> to vector<1x8x8xbf16>
    %82 = vector.extract_strided_slice %32 {offsets = [0, 16], sizes = [8, 8], strides = [1, 1]} : vector<8x32xbf16> to vector<8x8xbf16>
    %83 = vector.shape_cast %82 : vector<8x8xbf16> to vector<1x8x8xbf16>
    %84 = vector.extract_strided_slice %35 {offsets = [0, 16], sizes = [8, 8], strides = [1, 1]} : vector<8x32xbf16> to vector<8x8xbf16>
    %85 = vector.shape_cast %84 : vector<8x8xbf16> to vector<1x8x8xbf16>
    "tpu.trace_start"() <{level = 10 : i32, message = "bnd,bmd->bnm"}> : () -> ()
    %cst_27 = arith.constant dense<0.000000e+00> : vector<1x8x8xf32>
    %86 = tpu.matmul %81, %83, %cst_27 {dimension_numbers = #tpu.dot_dimension_numbers<[2], [2], [1], [1], [0, 0, 0, 1, 1, 1], [0], [0]>} : vector<1x8x8xbf16>, vector<1x8x8xbf16>, vector<1x8x8xf32> -> vector<1x8x8xf32>
    "tpu.trace_stop"() : () -> ()
    %cst_28 = arith.constant 0.353553385 : f32
    %87 = vector.broadcast %cst_28 : f32 to vector<1x8x8xf32>
    %88 = arith.mulf %86, %87 : vector<1x8x8xf32>
    %cst_29 = arith.constant dense<0xFF800000> : vector<1x8xf32>
    %89 = vector.multi_reduction <maximumf>, %88, %cst_29 [2] : vector<1x8x8xf32> to vector<1x8xf32>
    %90 = vector.shape_cast %89 : vector<1x8xf32> to vector<1x8x1xf32>
    %91 = vector.broadcast %90 : vector<1x8x1xf32> to vector<1x8x8xf32>
    %92 = arith.subf %88, %91 : vector<1x8x8xf32>
    %93 = math.exp %92 : vector<1x8x8xf32>
    %cst_30 = arith.constant dense<0.000000e+00> : vector<1x8xf32>
    %94 = vector.multi_reduction <add>, %93, %cst_30 [2] : vector<1x8x8xf32> to vector<1x8xf32>
    %95 = vector.shape_cast %94 : vector<1x8xf32> to vector<1x8x1xf32>
    %96 = tpu.reciprocal %95 {approx = true} : vector<1x8x1xf32> -> vector<1x8x1xf32>
    %97 = vector.broadcast %96 : vector<1x8x1xf32> to vector<1x8x8xf32>
    %98 = arith.mulf %93, %97 : vector<1x8x8xf32>
    %99 = arith.truncf %98 : vector<1x8x8xf32> to vector<1x8x8xbf16>
    "tpu.trace_start"() <{level = 10 : i32, message = "bnm,bmd->bnd"}> : () -> ()
    %cst_31 = arith.constant dense<0.000000e+00> : vector<1x8x8xf32>
    %100 = tpu.matmul %99, %85, %cst_31 {dimension_numbers = #tpu.dot_dimension_numbers<[2], [1], [1], [2], [0, 0, 0, 1, 1, 2], [0], [0]>} : vector<1x8x8xbf16>, vector<1x8x8xbf16>, vector<1x8x8xf32> -> vector<1x8x8xf32>
    "tpu.trace_stop"() : () -> ()
    %101 = vector.shape_cast %100 : vector<1x8x8xf32> to vector<8x8xf32>
    %102 = vector.extract_strided_slice %29 {offsets = [0, 24], sizes = [8, 8], strides = [1, 1]} : vector<8x32xbf16> to vector<8x8xbf16>
    %103 = vector.shape_cast %102 : vector<8x8xbf16> to vector<1x8x8xbf16>
    %104 = vector.extract_strided_slice %32 {offsets = [0, 24], sizes = [8, 8], strides = [1, 1]} : vector<8x32xbf16> to vector<8x8xbf16>
    %105 = vector.shape_cast %104 : vector<8x8xbf16> to vector<1x8x8xbf16>
    %106 = vector.extract_strided_slice %35 {offsets = [0, 24], sizes = [8, 8], strides = [1, 1]} : vector<8x32xbf16> to vector<8x8xbf16>
    %107 = vector.shape_cast %106 : vector<8x8xbf16> to vector<1x8x8xbf16>
    "tpu.trace_start"() <{level = 10 : i32, message = "bnd,bmd->bnm"}> : () -> ()
    %cst_32 = arith.constant dense<0.000000e+00> : vector<1x8x8xf32>
    %108 = tpu.matmul %103, %105, %cst_32 {dimension_numbers = #tpu.dot_dimension_numbers<[2], [2], [1], [1], [0, 0, 0, 1, 1, 1], [0], [0]>} : vector<1x8x8xbf16>, vector<1x8x8xbf16>, vector<1x8x8xf32> -> vector<1x8x8xf32>
    "tpu.trace_stop"() : () -> ()
    %cst_33 = arith.constant 0.353553385 : f32
    %109 = vector.broadcast %cst_33 : f32 to vector<1x8x8xf32>
    %110 = arith.mulf %108, %109 : vector<1x8x8xf32>
    %cst_34 = arith.constant dense<0xFF800000> : vector<1x8xf32>
    %111 = vector.multi_reduction <maximumf>, %110, %cst_34 [2] : vector<1x8x8xf32> to vector<1x8xf32>
    %112 = vector.shape_cast %111 : vector<1x8xf32> to vector<1x8x1xf32>
    %113 = vector.broadcast %112 : vector<1x8x1xf32> to vector<1x8x8xf32>
    %114 = arith.subf %110, %113 : vector<1x8x8xf32>
    %115 = math.exp %114 : vector<1x8x8xf32>
    %cst_35 = arith.constant dense<0.000000e+00> : vector<1x8xf32>
    %116 = vector.multi_reduction <add>, %115, %cst_35 [2] : vector<1x8x8xf32> to vector<1x8xf32>
    %117 = vector.shape_cast %116 : vector<1x8xf32> to vector<1x8x1xf32>
    %118 = tpu.reciprocal %117 {approx = true} : vector<1x8x1xf32> -> vector<1x8x1xf32>
    %119 = vector.broadcast %118 : vector<1x8x1xf32> to vector<1x8x8xf32>
    %120 = arith.mulf %115, %119 : vector<1x8x8xf32>
    %121 = arith.truncf %120 : vector<1x8x8xf32> to vector<1x8x8xbf16>
    "tpu.trace_start"() <{level = 10 : i32, message = "bnm,bmd->bnd"}> : () -> ()
    %cst_36 = arith.constant dense<0.000000e+00> : vector<1x8x8xf32>
    %122 = tpu.matmul %121, %107, %cst_36 {dimension_numbers = #tpu.dot_dimension_numbers<[2], [1], [1], [2], [0, 0, 0, 1, 1, 2], [0], [0]>} : vector<1x8x8xbf16>, vector<1x8x8xbf16>, vector<1x8x8xf32> -> vector<1x8x8xf32>
    "tpu.trace_stop"() : () -> ()
    %123 = vector.shape_cast %122 : vector<1x8x8xf32> to vector<8x8xf32>
    %124 = tpu.concatenate %57, %79, %101, %123 in 1 : vector<8x8xf32>, vector<8x8xf32>, vector<8x8xf32>, vector<8x8xf32> -> vector<8x32xf32>
    %125 = arith.truncf %124 : vector<8x32xf32> to vector<8x32xbf16>
    %c0_37 = arith.constant 0 : index
    %c0_38 = arith.constant 0 : index
    %126 = vector.load %arg14[%c0_37, %c0_38] : memref<8x32xbf16, #tpu.memory_space<vmem>>, vector<8x32xbf16>
    tpu.vector_store %arg14[%c0_37, %c0_38], %125 {strides = array<i32>} : memref<8x32xbf16, #tpu.memory_space<vmem>>, vector<8x32xbf16>,
    %c0_39 = arith.constant 0 : index
    %c0_40 = arith.constant 0 : index
    %127 = vector.load %arg14[%c0_39, %c0_40] : memref<8x32xbf16, #tpu.memory_space<vmem>>, vector<8x32xbf16>
    %c0_41 = arith.constant 0 : index
    %c0_42 = arith.constant 0 : index
    %128 = vector.load %arg5[%c0_41, %c0_42] : memref<32x32xbf16, #tpu.memory_space<vmem>>, vector<32x32xbf16>
    %cst_43 = arith.constant dense<0.000000e+00> : vector<8x32xf32>
    %129 = tpu.matmul %127, %128, %cst_43 {dimension_numbers = #tpu.dot_dimension_numbers<[1], [0], [0], [1], [0, 0, 1, 1], [], []>} : vector<8x32xbf16>, vector<32x32xbf16>, vector<8x32xf32> -> vector<8x32xf32>
    %c0_44 = arith.constant 0 : index
    %c0_45 = arith.constant 0 : index
    %130 = vector.load %arg6[%c0_44, %c0_45] : memref<1x32xf32, #tpu.memory_space<vmem>>, vector<1x32xf32>
    %131 = vector.broadcast %130 : vector<1x32xf32> to vector<8x32xf32>
    %132 = arith.addf %129, %131 : vector<8x32xf32>
    %133 = arith.addf %1, %132 : vector<8x32xf32>
    %c0_46 = arith.constant 0 : index
    %c0_47 = arith.constant 0 : index
    %134 = vector.load %arg7[%c0_46, %c0_47] : memref<1x32xf32, #tpu.memory_space<vmem>>, vector<1x32xf32>
    %c0_48 = arith.constant 0 : index
    %c0_49 = arith.constant 0 : index
    %135 = vector.load %arg8[%c0_48, %c0_49] : memref<1x32xf32, #tpu.memory_space<vmem>>, vector<1x32xf32>
    %cst_50 = arith.constant dense<0.000000e+00> : vector<8xf32>
    %136 = vector.multi_reduction <add>, %133, %cst_50 [1] : vector<8x32xf32> to vector<8xf32>
    %137 = vector.shape_cast %136 : vector<8xf32> to vector<8x1xf32>
    %cst_51 = arith.constant 3.200000e+01 : f32
    %138 = vector.broadcast %cst_51 : f32 to vector<8x1xf32>
    %139 = arith.divf %137, %138 : vector<8x1xf32>
    %140 = vector.broadcast %139 : vector<8x1xf32> to vector<8x32xf32>
    %141 = arith.subf %133, %140 : vector<8x32xf32>
    %142 = arith.mulf %141, %141 : vector<8x32xf32>
    %cst_52 = arith.constant dense<0.000000e+00> : vector<8xf32>
    %143 = vector.multi_reduction <add>, %142, %cst_52 [1] : vector<8x32xf32> to vector<8xf32>
    %144 = vector.shape_cast %143 : vector<8xf32> to vector<8x1xf32>
    %cst_53 = arith.constant 3.200000e+01 : f32
    %145 = vector.broadcast %cst_53 : f32 to vector<8x1xf32>
    %146 = arith.divf %144, %145 : vector<8x1xf32>
    %147 = vector.broadcast %139 : vector<8x1xf32> to vector<8x32xf32>
    %148 = arith.subf %133, %147 : vector<8x32xf32>
    %cst_54 = arith.constant 9.99999974E-6 : f32
    %149 = vector.broadcast %cst_54 : f32 to vector<8x1xf32>
    %150 = arith.addf %146, %149 : vector<8x1xf32>
    %151 = math.rsqrt %150 : vector<8x1xf32>
    %152 = vector.broadcast %151 : vector<8x1xf32> to vector<8x32xf32>
    %153 = arith.mulf %148, %152 : vector<8x32xf32>
    %154 = vector.broadcast %134 : vector<1x32xf32> to vector<8x32xf32>
    %155 = arith.mulf %153, %154 : vector<8x32xf32>
    %156 = vector.broadcast %135 : vector<1x32xf32> to vector<8x32xf32>
    %157 = arith.addf %155, %156 : vector<8x32xf32>
    %158 = arith.truncf %157 : vector<8x32xf32> to vector<8x32xbf16>
    %cst_55 = arith.constant 0.000000e+00 : f32
    %159 = vector.broadcast %cst_55 : f32 to vector<8x32xf32>
    %c0_56 = arith.constant 0 : index
    %c0_57 = arith.constant 0 : index
    %160 = vector.load %arg9[%c0_56, %c0_57] : memref<32x64xbf16, #tpu.memory_space<vmem>>, vector<32x64xbf16>
    %cst_58 = arith.constant dense<0.000000e+00> : vector<8x64xf32>
    %161 = tpu.matmul %158, %160, %cst_58 {dimension_numbers = #tpu.dot_dimension_numbers<[1], [0], [0], [1], [0, 0, 1, 1], [], []>} : vector<8x32xbf16>, vector<32x64xbf16>, vector<8x64xf32> -> vector<8x64xf32>
    %c0_59 = arith.constant 0 : index
    %c0_60 = arith.constant 0 : index
    %162 = vector.load %arg10[%c0_59, %c0_60] : memref<1x64xf32, #tpu.memory_space<vmem>>, vector<1x64xf32>
    %163 = vector.broadcast %162 : vector<1x64xf32> to vector<8x64xf32>
    %164 = arith.addf %161, %163 : vector<8x64xf32>
    %cst_61 = arith.constant 5.000000e-01 : f32
    %165 = vector.broadcast %cst_61 : f32 to vector<8x64xf32>
    %166 = arith.mulf %165, %164 : vector<8x64xf32>
    %cst_62 = arith.constant 0.707106769 : f32
    %167 = vector.broadcast %cst_62 : f32 to vector<8x64xf32>
    %168 = arith.mulf %164, %167 : vector<8x64xf32>
    %169 = math.erf %168 : vector<8x64xf32>
    %cst_63 = arith.constant 1.000000e+00 : f32
    %170 = vector.broadcast %cst_63 : f32 to vector<8x64xf32>
    %171 = arith.addf %170, %169 : vector<8x64xf32>
    %172 = arith.mulf %166, %171 : vector<8x64xf32>
    %173 = arith.truncf %172 : vector<8x64xf32> to vector<8x64xbf16>
    %c0_64 = arith.constant 0 : index
    %c0_65 = arith.constant 0 : index
    %174 = vector.load %arg11[%c0_64, %c0_65] : memref<64x32xbf16, #tpu.memory_space<vmem>>, vector<64x32xbf16>
    %cst_66 = arith.constant dense<0.000000e+00> : vector<8x32xf32>
    %175 = tpu.matmul %173, %174, %cst_66 {dimension_numbers = #tpu.dot_dimension_numbers<[1], [0], [0], [1], [0, 0, 1, 1], [], []>} : vector<8x64xbf16>, vector<64x32xbf16>, vector<8x32xf32> -> vector<8x32xf32>
    %176 = arith.addf %159, %175 : vector<8x32xf32>
    %c0_67 = arith.constant 0 : index
    %c0_68 = arith.constant 0 : index
    %177 = vector.load %arg12[%c0_67, %c0_68] : memref<1x32xf32, #tpu.memory_space<vmem>>, vector<1x32xf32>
    %178 = vector.broadcast %177 : vector<1x32xf32> to vector<8x32xf32>
    %179 = arith.addf %176, %178 : vector<8x32xf32>
    %180 = arith.addf %133, %179 : vector<8x32xf32>
    %181 = vector.shape_cast %180 : vector<8x32xf32> to vector<1x8x32xf32>
    %c0_69 = arith.constant 0 : index
    %c0_70 = arith.constant 0 : index
    %c0_71 = arith.constant 0 : index
    %182 = vector.load %arg13[%c0_69, %c0_70, %c0_71] : memref<1x8x32xf32, #tpu.memory_space<vmem>>, vector<1x8x32xf32>
    tpu.vector_store %arg13[%c0_69, %c0_70, %c0_71], %181 {strides = array<i32>} : memref<1x8x32xf32, #tpu.memory_space<vmem>>, vector<1x8x32xf32>,
    return
  }
  func.func @transform_0(%arg0: i32) -> (i32, i32, i32) {
    %c0_i32 = arith.constant 0 : i32
    %c0_i32_0 = arith.constant 0 : i32
    %c0_i32_1 = arith.constant 0 : i32
    return %arg0, %c0_i32, %c0_i32_0 : i32, i32, i32
  }
  func.func @transform_1(%arg0: i32) -> (i32, i32) {
    %c0_i32 = arith.constant 0 : i32
    %c0_i32_0 = arith.constant 0 : i32
    %c0_i32_1 = arith.constant 0 : i32
    return %c0_i32, %c0_i32_0 : i32, i32
  }
  func.func @transform_2(%arg0: i32) -> (i32, i32) {
    %c0_i32 = arith.constant 0 : i32
    %c0_i32_0 = arith.constant 0 : i32
    %c0_i32_1 = arith.constant 0 : i32
    return %c0_i32, %c0_i32_0 : i32, i32
  }
  func.func @transform_3(%arg0: i32) -> (i32, i32) {
    %c0_i32 = arith.constant 0 : i32
    %c0_i32_0 = arith.constant 0 : i32
    %c0_i32_1 = arith.constant 0 : i32
    return %c0_i32, %c0_i32_0 : i32, i32
  }
  func.func @transform_4(%arg0: i32) -> (i32, i32) {
    %c0_i32 = arith.constant 0 : i32
    %c0_i32_0 = arith.constant 0 : i32
    %c0_i32_1 = arith.constant 0 : i32
    return %c0_i32, %c0_i32_0 : i32, i32
  }
  func.func @transform_5(%arg0: i32) -> (i32, i32) {
    %c0_i32 = arith.constant 0 : i32
    %c0_i32_0 = arith.constant 0 : i32
    %c0_i32_1 = arith.constant 0 : i32
    return %c0_i32, %c0_i32_0 : i32, i32
  }
  func.func @transform_6(%arg0: i32) -> (i32, i32) {
    %c0_i32 = arith.constant 0 : i32
    %c0_i32_0 = arith.constant 0 : i32
    %c0_i32_1 = arith.constant 0 : i32
    return %c0_i32, %c0_i32_0 : i32, i32
  }
  func.func @transform_7(%arg0: i32) -> (i32, i32) {
    %c0_i32 = arith.constant 0 : i32
    %c0_i32_0 = arith.constant 0 : i32
    %c0_i32_1 = arith.constant 0 : i32
    return %c0_i32, %c0_i32_0 : i32, i32
  }
  func.func @transform_8(%arg0: i32) -> (i32, i32) {
    %c0_i32 = arith.constant 0 : i32
    %c0_i32_0 = arith.constant 0 : i32
    %c0_i32_1 = arith.constant 0 : i32
    return %c0_i32, %c0_i32_0 : i32, i32
  }
  func.func @transform_9(%arg0: i32) -> (i32, i32) {
    %c0_i32 = arith.constant 0 : i32
    %c0_i32_0 = arith.constant 0 : i32
    %c0_i32_1 = arith.constant 0 : i32
    return %c0_i32, %c0_i32_0 : i32, i32
  }
  func.func @transform_10(%arg0: i32) -> (i32, i32) {
    %c0_i32 = arith.constant 0 : i32
    %c0_i32_0 = arith.constant 0 : i32
    %c0_i32_1 = arith.constant 0 : i32
    return %c0_i32, %c0_i32_0 : i32, i32
  }
  func.func @transform_11(%arg0: i32) -> (i32, i32) {
    %c0_i32 = arith.constant 0 : i32
    %c0_i32_0 = arith.constant 0 : i32
    %c0_i32_1 = arith.constant 0 : i32
    return %c0_i32, %c0_i32_0 : i32, i32
  }
  func.func @transform_12(%arg0: i32) -> (i32, i32, i32) {
    %c0_i32 = arith.constant 0 : i32
    %c0_i32_0 = arith.constant 0 : i32
    %c0_i32_1 = arith.constant 0 : i32
    return %arg0, %c0_i32, %c0_i32_0 : i32, i32, i32
  }
}

</mosaic_0001>

<bundles_post_ra>
// kernel: tpu_custom_call.1
= control target key start
LH: loop header
LB: loop body
LE: loop exit
PB: predicated region body
PF: predicated region fallthrough
CT: control target
= control target key end

     0   :  { %17 = vsyncpa [#allocation4], 0  ;;  %s2152_s0 = inlined_call_operand.vmem [shape: f32[2,8,32], index: 0, kind: input, shape index: {}]   ;;  %s2153_s1 = inlined_call_operand.vmem [shape: f32[1,32], index: 1, kind: input, shape index: {}]   ;;  %s2154_s2 = inlined_call_operand.vmem [shape: f32[1,32], index: 2, kind: input, shape index: {}]   ;;  %s2155_s3 = inlined_call_operand.vmem [shape: bf16[32,96], index: 3, kind: input, shape index: {}]   ;;  %s2156_s4 = inlined_call_operand.vmem [shape: bf16[32,32], index: 4, kind: input, shape index: {}]   ;;  %s2157_s5 = inlined_call_operand.vmem [shape: f32[1,32], index: 5, kind: input, shape index: {}]   ;;  %s2158_s6 = inlined_call_operand.vmem [shape: f32[1,32], index: 6, kind: input, shape index: {}]   ;;  %s2159_s7 = inlined_call_operand.vmem [shape: f32[1,32], index: 7, kind: input, shape index: {}]   ;;  %s2160_s8 = inlined_call_operand.hbm [shape: bf16[32,64], index: 8, kind: input, shape index: {}]   ;;  %s2161_s9 = inlined_call_operand.vmem [shape: f32[1,64], index: 9, kind: input, shape index: {}]   ;;  %s2162_s10 = inlined_call_operand.vmem [shape: bf16[64,32], index: 10, kind: input, shape index: {}]   ;;  %s2163_s11 = inlined_call_operand.vmem [shape: f32[1,32], index: 11, kind: input, shape index: {}]   ;;  %s2164_s12 = inlined_call_operand.hbm [shape: f32[2,8,32], index: 12, kind: output, shape index: {}]  }
   0x1   :  { %18 = vsyncpa [#allocation5], 0 }
   0x2   :  { %20 = vsyncpa [#allocation5 + $0x1], 0  ;;  %s1863_s21 = smov 0   ;;  %s1865_s22 = smov 0  }
   0x3   :  { %s1867_s23 = smov 0   ;;  %s1869_s24 = smov 0  }
   0x4 LB: > { %2169 = sst [smem:[#allocation9_spill]] %s1778_s23  ;;  %s1884_s25 = sadd.s32 4294967295, %s1782_s24   ;;  %s1782_s24 = sphi %s1869_s24, %s2185_s24   ;;  %s1778_s23 = sphi %s1867_s23, %s2184_s23   ;;  %s1774_s22 = sphi %s1865_s22, %s2183_s22   ;;  %s1770_s21 = sphi %s1863_s21, %s2182_s21  }
   0x5   : > { %s1415_s26 = sadd.s32 4294967294, %s1782_s24   ;;  %s1888_s27 = sadd.s32 1, %s1782_s24  }
   0x6   : > { %s290_s28 = sadd.s32 1, %s1778_s23  ;;  %s287_s29 = ssub.s32 %s1782_s24, %s1888_s27 }
   0x7   : > { %p300_p0 = scmp.ne.s32.totalorder %s1778_s23, %s1774_s22  ;;  %p288_p1 = scmp.eq.s32.totalorder %s287_s29, 0 }
   0x8   : > { %p301_p2 = scmp.eq.s32.totalorder %s1884_s25, 1  ;;  %p306_p3 = scmp.ne.s32.totalorder %s1774_s22, %s1770_s21 }
   0x9   : > { %p307_p4 = scmp.eq.s32.totalorder %s1415_s26, 1  ;;  %p1416_p7 = scmp.ge.s32.totalorder %s1782_s24, 1 }
   0xa   : > { %s1899_s30 = scalar_select %p288_p1, %s1778_s23, %s290_s28  }
   0xb   : > { %p1901_p5 = por %p301_p2, %p300_p0  ;;  %p1905_p6 = por %p307_p4, %p306_p3 }
   0xc   : > { %2170 = sst [smem:[#allocation10_spill]] %s1899_s30  ;;  %p314_p8 = scmp.lt.s32.totalorder %s1782_s24, 3 }
   0xd   : > { %s2171_s13 = scalar_select %p1901_p5, 1, 0 }
   0xe   : > { %s2172_s14 = scalar_select %p1905_p6, 1, 0 }
   0xf   : > { %p2166_p9 = scmp.eq.s32.totalorder %s1884_s25, 0  ;;  %p1912_p10 = pnand %p1416_p7, %p314_p8 }
  0x10   : > { %s1784_s16 = smov [#allocation3]   ;;  %s1688_s26 = scalar_lea.hbm %s2160_s8, 256 }
  0x11   : > { %s2173_s15 = scalar_select %p1912_p10, 1, 0 }
  0x12   : > { %s347_s17 = sshll.u32 %s1784_s16, 4  ;;  %p1600_p11 = pneg %p1912_p10  ;;  %s348_s17 = int_to_ptr.vmem [resolvable:$true] %s347_s17 }
  0x13   : > { %p1689_p13 = scmp.ne.s32.totalorder %s2160_s8, %s1688_s26  ;;  %p1695_p3 = scmp.lt.u32.totalorder %s1688_s26, %s2160_s8 }
  0x14   : > { %p1920_p12 = pnand %p2166_p9, %p1600_p11 }
  0x16   : > { %p1690_p0 = pneg %p1920_p12 }
  0x18   : > { %p1691_p1 = pnand %p1690_p0, %p1689_p13 }
  0x1a   : > { %p1692_p2 = pneg %p1691_p1 }
  0x1c   : > { %p1697_p4 = pnand %p1695_p3, %p1692_p2 }
  0x1e   : > { %1700 = shalt.err (!%p1697_p4)
}
  0x1f   : > { %s1701_s23 = scalar_lea.vmem %s348_s17, 256  ;;  %p1709_p9 = scmp.lt.s32.totalorder %s348_s17, %s348_s17 }
  0x20   : > { %p1702_p7 = scmp.ne.s32.totalorder %s348_s17, %s1701_s23  ;;  %p1710_p6 = scmp.lt.s32.totalorder %s1701_s23, %s1701_s23 }
  0x22   : > { %p1704_p8 = pnand %p1702_p7, %p1690_p0  ;;  %p1711_p5 = por %p1710_p6, %p1709_p9 }
  0x24   : > { %p1705_p11 = pneg %p1704_p8 }
  0x26   : > { %p1712_p10 = pnand %p1711_p5, %p1705_p11 }
  0x28   : > { %1715 = shalt.err (!%p1712_p10)
}
  0x29   : > { %s1785_s19 = smov 64   ;;  %s1786_s20 = smov 4  }
  0x2a   : > { %1603 = dma.hbm_to_vmem [thread:$0]  (!%p1920_p12), %s2160_s8, 256, %s348_s17, [#allocation4], %s1785_s19, %s1785_s19, %s1786_s20  }
  0x2b   : > { %p2175_p13 = scmp.ne.s32.totalorder %s2173_s15, 0 }
  0x2c   : > { %p2176_p1 = scmp.eq.s32.totalorder (!%p2175_p13), %s1884_s25, 0 }
  0x2d   : > { %379 = sbr.rel (%p2175_p13) target bundleno = 2627 (0xa43), region = 68 }
  0x34   : > { %1761 = dma.done.wait (%p2176_p1), [#allocation4], 256   ;;  %p2177_p0 = pmov %p2176_p1 }
  0x35   : > { %p420_p5 = scmp.lt.s32.totalorder %s1884_s25, 1  ;;  %vm428_vm0 = vcmask 261120   ;;  %v1958_v2 = vld [vmem:[%s2155_s3] sm:$0xff]   ;;  %s1787_s19 = smov 96   ;;  %v1657_v3 = vld [vmem:[%s2155_s3 + $0x8] sm:$0xff]   ;;  %v1788_v10 = vmov 0.0  }
  0x36   : > { %1763 = vsyncadd (%p2177_p0), [#allocation4], 4294967040  ;;  %518 = vrot.lane.b32.xlu1 %v1958_v2, %s1787_s19  ;;  %1494 = vmatprep.subr.bf16.mxu0 %v1788_v10  ;;  %vm1789_vm1 = vmmov 0   ;;  %v1423_v16 = vld [vmem:[%s2153_s1] ss:$0 sm:$0xff]  ;;  %vm612_vm2 = vcmask 64512  }
  0x37   : > { %s421_s23 = scalar_select %p420_p5, %s1884_s25, 1  ;;  %1502 = vmatprep.subr.bf16.mxu1 %v1788_v10  ;;  %1495 = vmatpush3.bf16.msra.mxu0 %v1958_v2  ;;  %v1424_v18 = vld [vmem:[%s2154_s2] ss:$0 sm:$0xff]  ;;  %vm675_vm3 = vcmask 1043456   ;;  %vm1068_vm4 = vcmask 130048   ;;  %vm1070_vm5 = vcmask 195584  }
  0x38   : > { %1496 = vmatprep.subr.bf16.mxu0 %v1788_v10  ;;  %1498 = vmatprep.mubr.msk.bf16.mxu0 %vm1789_vm1, %v1788_v10  ;;  %s1790_s18 = smov 120   ;;  %s1792_s15 = smov 64   ;;  %vm1073_vm6 = vcmask 257024   ;;  %vm1284_vm7 = vcmask 523264  }
  0x39   : > { %s1422_s30 = sshll.u32 %s421_s23, 3  ;;  %1506 = vmatprep.mubr.msk.bf16.mxu1 %vm1789_vm1, %v1788_v10  ;;  %s1793_s17 = smov 104  }
  0x3a   : > { %s423_s16 = scalar_lea.vmem %s2152_s0, %s1422_s30  ;;  %520 = vrot.lane.b32.xlu1 %v1657_v3, %s1787_s19  ;;  %s1794_s19 = smov 8  }
  0x3b   : > { %v1951_v0 = vld [vmem:[%s423_s16] sm:$0xff]  ;;  %1497 = vmatpush3.bf16.msra.mxu0 %v1657_v3  ;;  %s1791_s16 = smov 112   ;;  %s1795_s20 = smov 16  }
  0x3c   : > { %v429_v1 = vsel %vm428_vm0, %v1951_v0, 0.0  ;;  %1510 = vmatprep.subr.bf16.mxu0 %v1788_v10  ;;  %s1796_s26 = smov 24   ;;  %s1455_s30 = sshll.u32 %s1884_s25, 7 }
  0x3d   : > { %430 = vadd.xlane.f32.xlu0 %v429_v1  ;;  %p2178_p9 = scmp.ne.s32.totalorder %s2171_s13, 0 }
  0xa8   : > { %v519_v9 = vpop.permute.xlu1 %518 }
  0xa9   : > { %1503 = vmatpush3.bf16.msra.mxu1 %v519_v9 }
  0xaa   : > { %1504 = vmatprep.subr.bf16.mxu1 %v1788_v10 }
  0xac   : > { %v521_v11 = vpop.permute.xlu1 %520 }
  0xad   : > { %1505 = vmatpush3.bf16.msra.mxu1 %v521_v11 }
  0xae   : > { %1518 = vmatprep.subr.bf16.mxu1 %v1788_v10 }
  0xca   : > { %v431_v4 = vpop.xlane.xlu0 %430 }
  0xcb   : > { %v433_v5 = vmul.f32 0.03125, %v431_v4 }
  0xcd   : > { %v434_v6 = vsub.f32 %v1951_v0, %v433_v5 }
  0xcf   : > { %v435_v7 = vmul.f32 %v434_v6, %v434_v6 }
  0xd1   : > { %v436_v8 = vsel %vm428_vm0, %v435_v7, 0.0 }
  0xd2   : > { %437 = vadd.xlane.f32.xlu0 %v436_v8 }
 0x15f   : > { %v438_v12 = vpop.xlane.xlu0 %437 }
 0x160   : > { %v439_v13 = vmul.f32 0.03125, %v438_v12 }
 0x162   : > { %v440_v14 = vadd.f32 1e-05, %v439_v13 }
 0x164   : > { %1666 = vrsqrt.f32 %v440_v14 }
 0x16e   : > { %v1667_v15 = vpop.eup %1666 }
 0x16f   : > { %v442_v17 = vmul.f32 %v1667_v15, %v434_v6 }
 0x171   : > { %v449_v19 = vmul.f32 %v1423_v16, %v442_v17 }
 0x173   : > { %v456_v20 = vadd.f32 %v1424_v18, %v449_v19 }
 0x175   : > { %v457_v21 = vpack.c.bf16 %v456_v20, %v456_v20 }
 0x177   : > { %1499 = vmatmul.mubr.msk.bf16.vlgmr.msra.gmra.mrb[0].mxu0 %vm428_vm0, %v457_v21  ;;  %1507 = vmatmul.mubr.msk.bf16.vlgmr.msra.gmra.mrb[0].mxu1 %vm428_vm0, %v457_v21 }
 0x178   : > { %1520 = vmatprep.mubr.msk.bf16.mxu1 %vm1789_vm1, %v1788_v10  ;;  %1514 = vmatprep.mubr.msk.bf16.mxu0 %vm1789_vm1, %v1788_v10 }
 0x24a   : > { %v511_v22 = vpop.f32.mrb[0].mxu0  ;;  %v558_v23 = vpop.f32.mrb[0].mxu1 }
 0x24b   : > { %v517_v24 = vpack.c.bf16 %v511_v22, %v511_v22  ;;  %v564_v25 = vpack.c.bf16 %v558_v23, %v558_v23  ;;  %v1500_v26 = vpop.f32.mrb[1].mxu0  ;;  %v1508_v27 = vpop.f32.mrb[1].mxu1 }
 0x24c   : > { %v514_v28 = vpop.f32.mrb[2].mxu0  ;;  %v561_v29 = vpop.f32.mrb[2].mxu1 }
 0x24d   : > { %723 = vrot.lane.b32.xlu0 %v564_v25, %s1790_s18  ;;  %v1509_v30 = vpop.f32.mrb[3].mxu1  ;;  %720 = vrot.lane.b32.xlu1 %v517_v24, %s1790_s18  ;;  %v1501_v31 = vpop.f32.mrb[3].mxu0  ;;  %v617_v32 = vsel %vm612_vm2, %v564_v25, 0 }
 0x24e   : > { %1519 = vmatpush3.bf16.xpose.msra.mxu1 %v617_v32 }
 0x24f   : > { %1530 = vmatprep.subr.bf16.mxu1 %v1788_v10 }
 0x251   : > { %835 = vrot.lane.b32.xlu1 %v564_v25, %s1791_s16  ;;  %567 = vrot.lane.b32.xlu0 %v1657_v3, %s1792_s15 }
 0x255   : > { %833 = vrot.lane.b32.xlu1 %v517_v24, %s1791_s16  ;;  %1521 = vmatmul.mubr.msk.bf16.vlgmr.msra.gmra.mrb[4].mxu1 %vm612_vm2, %v517_v24 }
 0x256   : > { %1532 = vmatprep.mubr.msk.bf16.mxu1 %vm1789_vm1, %v1788_v10 }
 0x259   : > { %946 = vrot.lane.b32.xlu1 %v564_v25, %s1793_s17 }
 0x25d   : > { %944 = vrot.lane.b32.xlu1 %v517_v24, %s1793_s17 }
 0x261   : > { %565 = vrot.lane.b32.xlu1 %v1958_v2, %s1792_s15 }
 0x2bf   : > { %v724_v33 = vpop.permute.xlu0 %723  ;;  %v721_v34 = vpop.permute.xlu1 %720 }
 0x2c0   : > { %v729_v35 = vsel %vm612_vm2, %v724_v33, 0 }
 0x2c1   : > { %1531 = vmatpush3.bf16.xpose.msra.mxu1 %v729_v35 }
 0x2c2   : > { %1542 = vmatprep.subr.bf16.mxu1 %v1788_v10 }
 0x2c3   : > { %v836_v36 = vpop.permute.xlu1 %835  ;;  %v568_v43 = vpop.permute.xlu0 %567 }
 0x2c4   : > { %v841_v38 = vsel %vm612_vm2, %v836_v36, 0 }
 0x2c7   : > { %v834_v37 = vpop.permute.xlu1 %833 }
 0x2c8   : > { %1533 = vmatmul.mubr.msk.bf16.vlgmr.msra.gmra.mrb[8].mxu1 %vm612_vm2, %v721_v34 }
 0x2c9   : > { %1543 = vmatpush3.bf16.xpose.msra.mxu1 %v841_v38  ;;  %1544 = vmatprep.mubr.msk.bf16.mxu1 %vm1789_vm1, %v1788_v10 }
 0x2ca   : > { %1554 = vmatprep.subr.bf16.mxu1 %v1788_v10 }
 0x2cb   : > { %v947_v39 = vpop.permute.xlu1 %946 }
 0x2cc   : > { %v952_v41 = vsel %vm612_vm2, %v947_v39, 0 }
 0x2cf   : > { %v945_v40 = vpop.permute.xlu1 %944 }
 0x2d0   : > { %1545 = vmatmul.mubr.msk.bf16.vlgmr.msra.gmra.mrb[12].mxu1 %vm612_vm2, %v834_v37 }
 0x2d1   : > { %1555 = vmatpush3.bf16.xpose.msra.mxu1 %v952_v41  ;;  %1556 = vmatprep.mubr.msk.bf16.mxu1 %vm1789_vm1, %v1788_v10 }
 0x2d2   : > { %1566 = vmatprep.subr.bf16.mxu1 %v1788_v10 }
 0x2d3   : > { %v566_v42 = vpop.permute.xlu1 %565 }
 0x2d4   : > { %1511 = vmatpush3.bf16.msra.mxu0 %v566_v42 }
 0x2d5   : > { %1512 = vmatprep.subr.bf16.mxu0 %v1788_v10 }
 0x2d8   : > { %1513 = vmatpush3.bf16.msra.mxu0 %v568_v43  ;;  %1557 = vmatmul.mubr.msk.bf16.vlgmr.msra.gmra.mrb[16].mxu1 %vm612_vm2, %v945_v40 }
 0x2d9   : > { %1524 = vmatprep.subr.bf16.mxu0 %v1788_v10  ;;  %1570 = vmatprep.mubr.msk.bf16.mxu1 %vm1789_vm1, %v1788_v10 }
 0x2db   : > { %1515 = vmatmul.mubr.msk.bf16.vlgmr.msra.gmra.mrb[4].mxu0 %vm428_vm0, %v457_v21 }
 0x2dc   : > { %1526 = vmatprep.mubr.msk.bf16.mxu0 %vm1789_vm1, %v1788_v10 }
 0x328   : > { %v653_v44 = vpop.f32.mrb[4].mxu1 }
 0x329   : > { %v659_v45 = vmul.f32 0.35355338, %v653_v44  ;;  %v1522_v46 = vpop.f32.mrb[5].mxu1 }
 0x32a   : > { %v656_v47 = vpop.f32.mrb[6].mxu1 }
 0x32b   : > { %v1523_v48 = vpop.f32.mrb[7].mxu1  ;;  %v660_v49 = vsel %vm612_vm2, %v659_v45, -inf }
 0x32c   : > { %661 = vmax.xlane.f32.xlu1 %v660_v49 }
 0x39b   : > { %v765_v50 = vpop.f32.mrb[8].mxu1 }
 0x39c   : > { %v771_v51 = vmul.f32 0.35355338, %v765_v50  ;;  %v1534_v52 = vpop.f32.mrb[9].mxu1 }
 0x39d   : > { %v768_v53 = vpop.f32.mrb[10].mxu1 }
 0x39e   : > { %v1535_v54 = vpop.f32.mrb[11].mxu1  ;;  %v772_v55 = vsel %vm612_vm2, %v771_v51, -inf }
 0x39f   : > { %773 = vmax.xlane.f32.xlu0 %v772_v55 }
 0x3a3   : > { %v877_v56 = vpop.f32.mrb[12].mxu1 }
 0x3a4   : > { %v883_v57 = vmul.f32 0.35355338, %v877_v56  ;;  %v1546_v58 = vpop.f32.mrb[13].mxu1 }
 0x3a5   : > { %v880_v59 = vpop.f32.mrb[14].mxu1 }
 0x3a6   : > { %v1547_v60 = vpop.f32.mrb[15].mxu1  ;;  %v884_v61 = vsel %vm612_vm2, %v883_v57, -inf }
 0x3a7   : > { %885 = vmax.xlane.f32.xlu0 %v884_v61 }
 0x3ab   : > { %v988_v62 = vpop.f32.mrb[16].mxu1 }
 0x3ac   : > { %v994_v63 = vmul.f32 0.35355338, %v988_v62  ;;  %v1558_v1 = vpop.f32.mrb[17].mxu1 }
 0x3ad   : > { %v991_v2 = vpop.f32.mrb[18].mxu1 }
 0x3ae   : > { %v605_v3 = vpop.f32.mrb[4].mxu0  ;;  %v1559_v4 = vpop.f32.mrb[19].mxu1  ;;  %v995_v5 = vsel %vm612_vm2, %v994_v63, -inf }
 0x3af   : > { %v611_v6 = vpack.c.bf16 %v605_v3, %v605_v3  ;;  %996 = vmax.xlane.f32.xlu1 %v995_v5  ;;  %v1516_v7 = vpop.f32.mrb[5].mxu0  ;;  %v1658_v3 = vld [vmem:[%s2156_s4] sm:$0xff]   ;;  %v1659_v4 = vld [vmem:[%s2156_s4 + $0x8] sm:$0xff]  }
 0x3b0   : > { %v608_v8 = vpop.f32.mrb[6].mxu0  ;;  %1567 = vmatpush3.bf16.msra.mxu1 %v1658_v3 }
 0x3b1   : > { %v1517_v9 = vpop.f32.mrb[7].mxu0  ;;  %v677_v11 = vsel %vm675_vm3, %v611_v6, 0  ;;  %1568 = vmatprep.subr.bf16.mxu1 %v1788_v10 }
 0x3b2   : > { %1525 = vmatpush3.bf16.msra.mxu0 %v677_v11 }
 0x3b3   : > { %1536 = vmatprep.subr.bf16.mxu0 %v1788_v10 }
 0x3b4   : > { %1569 = vmatpush3.bf16.msra.mxu1 %v1659_v4 }
 0x3b5   : > { %1582 = vmatprep.subr.bf16.mxu1 %v1788_v10 }
 0x3b9   : > { %v662_v12 = vpop.xlane.xlu1 %661 }
 0x3ba   : > { %v663_v13 = vsub.f32 %v659_v45, %v662_v12 }
 0x3bc   : > { %v664_v14 = vmul.f32 1.442695, %v663_v13 }
 0x3be   : > { %1668 = vpow2.f32 %v664_v14 }
 0x3c8   : > { %v1669_v15 = vpop.eup %1668 }
 0x3c9   : > { %v666_v16 = vsel %vm612_vm2, %v1669_v15, 0.0 }
 0x3ca   : > { %667 = vadd.xlane.f32.xlu0 %v666_v16 }
 0x42c   : > { %v774_v17 = vpop.xlane.xlu0 %773 }
 0x42d   : > { %v775_v18 = vsub.f32 %v771_v51, %v774_v17 }
 0x42f   : > { %v776_v19 = vmul.f32 1.442695, %v775_v18  ;;  %v1438_v18 = vld [vmem:[%s2157_s5] ss:$0 sm:$0xff] }
 0x431   : > { %1670 = vpow2.f32 %v776_v19 }
 0x434   : > { %v886_v20 = vpop.xlane.xlu0 %885 }
 0x435   : > { %v887_v21 = vsub.f32 %v883_v57, %v886_v20 }
 0x437   : > { %v888_v22 = vmul.f32 1.442695, %v887_v21 }
 0x439   : > { %1672 = vpow2.f32 %v888_v22 }
 0x43b   : > { %v1671_v23 = vpop.eup %1670 }
 0x43c   : > { %v778_v24 = vsel %vm612_vm2, %v1671_v23, 0.0  ;;  %v997_v28 = vpop.xlane.xlu1 %996 }
 0x43d   : > { %779 = vadd.xlane.f32.xlu1 %v778_v24  ;;  %v998_v29 = vsub.f32 %v994_v63, %v997_v28 }
 0x43f   : > { %v999_v30 = vmul.f32 1.442695, %v998_v29 }
 0x443   : > { %v1673_v25 = vpop.eup %1672 }
 0x444   : > { %v890_v26 = vsel %vm612_vm2, %v1673_v25, 0.0 }
 0x445   : > { %891 = vadd.xlane.f32.xlu0 %v890_v26 }
 0x44e   : > { %896 = vrot.lane.b32.xlu1 %v611_v6, %s1791_s16 }
 0x457   : > { %v668_v27 = vpop.xlane.xlu0 %667 }
 0x458   : > { %1674 = vrcp.f32 %v668_v27 }
 0x459   : > { %1676 = vpow2.f32 %v999_v30 }
 0x45b   : > { %785 = vrot.lane.b32.xlu0 %v611_v6, %s1790_s18 }
 0x462   : > { %v1675_v31 = vpop.eup %1674 }
 0x463   : > { %v670_v32 = vmul.f32 %v1675_v31, %v1669_v15  ;;  %v1677_v34 = vpop.eup %1676  ;;  %v1660_v31 = vld [vmem:[#allocation3] sm:$0xff]  }
 0x464   : > { %v1001_v35 = vsel %vm612_vm2, %v1677_v34, 0.0 }
 0x465   : > { %v671_v33 = vpack.c.bf16 %v670_v32, %v670_v32  ;;  %v1661_v32 = vld [vmem:[#allocation3 + $0x8] sm:$0xff]  }
 0x467   : > { %1527 = vmatmul.mubr.msk.bf16.vlgmr.msra.gmra.mrb[8].mxu0 %vm612_vm2, %v671_v33 }
 0x468   : > { %1538 = vmatprep.mubr.msk.bf16.mxu0 %vm1789_vm1, %v1788_v10 }
 0x472   : > { %1002 = vadd.xlane.f32.xlu1 %v1001_v35 }
 0x483   : > { %1007 = vrot.lane.b32.xlu1 %v611_v6, %s1793_s17  ;;  %s2109_s17 = scalar_lea.hbm %s2164_s12, %s1455_s30 }
 0x4ca   : > { %v780_v36 = vpop.xlane.xlu1 %779 }
 0x4cb   : > { %1678 = vrcp.f32 %v780_v36  ;;  %v1442_v36 = vld [vmem:[%s2158_s6] ss:$0 sm:$0xff] }
 0x4ce   : > { %v897_v42 = vpop.permute.xlu1 %896 }
 0x4cf   : > { %v902_v44 = vsel %vm675_vm3, %v897_v42, 0  ;;  %v1662_v42 = vld [vmem:[%s2162_s10] sm:$0xff]  }
 0x4d2   : > { %v892_v37 = vpop.xlane.xlu0 %891 }
 0x4d3   : > { %1680 = vrcp.f32 %v892_v37 }
 0x4d5   : > { %v1679_v38 = vpop.eup %1678 }
 0x4d6   : > { %v782_v39 = vmul.f32 %v1679_v38, %v1671_v23  ;;  %v786_v40 = vpop.permute.xlu0 %785  ;;  %v1443_v38 = vld [vmem:[%s2159_s7] ss:$0 sm:$0xff] }
 0x4d7   : > { %v791_v41 = vsel %vm675_vm3, %v786_v40, 0 }
 0x4d8   : > { %1537 = vmatpush3.bf16.msra.mxu0 %v791_v41  ;;  %v783_v43 = vpack.c.bf16 %v782_v39, %v782_v39 }
 0x4d9   : > { %1548 = vmatprep.subr.bf16.mxu0 %v1788_v10 }
 0x4db   : > { %1539 = vmatmul.mubr.msk.bf16.vlgmr.msra.gmra.mrb[12].mxu0 %vm612_vm2, %v783_v43  ;;  %v1663_v43 = vld [vmem:[%s2162_s10 + $0x8] sm:$0xff]  }
 0x4dc   : > { %1549 = vmatpush3.bf16.msra.mxu0 %v902_v44  ;;  %1550 = vmatprep.mubr.msk.bf16.mxu0 %vm1789_vm1, %v1788_v10  ;;  %v1664_v44 = vld [vmem:[%s2162_s10 + $0x10] sm:$0xff]  }
 0x4dd   : > { %v1681_v45 = vpop.eup %1680  ;;  %1560 = vmatprep.subr.bf16.mxu0 %v1788_v10 }
 0x4de   : > { %v894_v46 = vmul.f32 %v1681_v45, %v1673_v25  ;;  %v1665_v45 = vld [vmem:[%s2162_s10 + $0x18] sm:$0xff]  }
 0x4e0   : > { %v895_v47 = vpack.c.bf16 %v894_v46, %v894_v46  ;;  %v1444_v46 = vld [vmem:[%s2161_s9] ss:$0 sm:$0xff] }
 0x4e3   : > { %1551 = vmatmul.mubr.msk.bf16.vlgmr.msra.gmra.mrb[16].mxu0 %vm612_vm2, %v895_v47 }
 0x4e4   : > { %1562 = vmatprep.mubr.msk.bf16.mxu0 %vm1789_vm1, %v1788_v10 }
 0x4ff   : > { %v1003_v48 = vpop.xlane.xlu1 %1002 }
 0x500   : > { %1682 = vrcp.f32 %v1003_v48 }
 0x503   : > { %v1008_v49 = vpop.permute.xlu1 %1007 }
 0x504   : > { %v1013_v50 = vsel %vm675_vm3, %v1008_v49, 0 }
 0x505   : > { %1561 = vmatpush3.bf16.msra.mxu0 %v1013_v50 }
 0x506   : > { %1574 = vmatprep.subr.bf16.mxu0 %v1788_v10 }
 0x50a   : > { %v1683_v51 = vpop.eup %1682 }
 0x50b   : > { %v1005_v52 = vmul.f32 %v1683_v51, %v1677_v34 }
 0x50d   : > { %v1006_v53 = vpack.c.bf16 %v1005_v52, %v1005_v52 }
 0x50f   : > { %1563 = vmatmul.mubr.msk.bf16.vlgmr.msra.gmra.mrb[20].mxu0 %vm612_vm2, %v1006_v53 }
 0x510   : > { %1578 = vmatprep.mubr.msk.bf16.mxu0 %vm1789_vm1, %v1788_v10  ;;  %1575 = vmatpush3.bf16.msra.mxu0 %v1660_v31 }
 0x511   : > { %1576 = vmatprep.subr.bf16.mxu0 %v1788_v10 }
 0x514   : > { %1577 = vmatpush3.bf16.msra.mxu0 %v1661_v32 }
 0x53a   : > { %v713_v54 = vpop.f32.mrb[8].mxu0 }
 0x53b   : > { %v1528_v55 = vpop.f32.mrb[9].mxu0 }
 0x53c   : > { %v716_v56 = vpop.f32.mrb[10].mxu0 }
 0x53d   : > { %v1529_v57 = vpop.f32.mrb[11].mxu0 }
 0x53e   : > { %v1448_v57 = vld [vmem:[%s2163_s11] ss:$0 sm:$0xff] }
 0x5ae   : > { %v827_v58 = vpop.f32.mrb[12].mxu0 }
 0x5af   : > { %1056 = vrot.lane.b32.xlu0 %v827_v58, %s1794_s19  ;;  %v1540_v59 = vpop.f32.mrb[13].mxu0 }
 0x5b0   : > { %v830_v60 = vpop.f32.mrb[14].mxu0 }
 0x5b1   : > { %v1541_v61 = vpop.f32.mrb[15].mxu0 }
 0x5b6   : > { %v938_v62 = vpop.f32.mrb[16].mxu0 }
 0x5b7   : > { %1060 = vrot.lane.b32.xlu1 %v938_v62, %s1795_s20  ;;  %v1552_v63 = vpop.f32.mrb[17].mxu0  ;;  %s417_s20 = sand.u32 1, %s1774_s22  }
 0x5b8   : > { %v941_v1 = vpop.f32.mrb[18].mxu0  ;;  %s1421_s28 = sshll.u32 %s417_s20, 3  ;;  %s1331_s25 = scalar_lea.sflag [#allocation5], %s417_s20 }
 0x5b9   : > { %v1553_v2 = vpop.f32.mrb[19].mxu0 }
 0x5e2   : > { %v1049_v5 = vpop.f32.mrb[20].mxu0 }
 0x5e3   : > { %1064 = vrot.lane.b32.xlu0 %v1049_v5, %s1796_s26  ;;  %v1564_v6 = vpop.f32.mrb[21].mxu0  ;;  %s419_s26 = scalar_lea.vmem [#allocation6], %s1421_s28  ;;  %s1797_s28 = smov [#allocation6]  }
 0x5e4   : > { %v1052_v7 = vpop.f32.mrb[22].mxu0  ;;  %s1344_s18 = sshll.u32 %s419_s26, 4  ;;  %s1720_s29 = sshll.u32 %s1797_s28, 4  ;;  %s2111_s18 = int_to_ptr.vmem [resolvable:$true] %s1344_s18  ;;  %s1721_s29 = int_to_ptr.vmem [resolvable:$false] %s1720_s29 }
 0x5e5   : > { %v1565_v8 = vpop.f32.mrb[23].mxu0  ;;  %s1716_s19 = scalar_lea.vmem %s2111_s18, 128  ;;  %s1722_s23 = scalar_lea.vmem %s1721_s29, 256 }
 0x5e6   : > { %p1717_p6 = scmp.ne.s32.totalorder %s2111_s18, %s1716_s19  ;;  %p1723_p2 = scmp.lt.s32.totalorder %s2111_s18, %s1721_s29 }
 0x5e7   : > { %p1724_p3 = scmp.lt.s32.totalorder %s1722_s23, %s1716_s19 }
 0x5e8   : > { %p1718_p10 = pnand %p1717_p6, %p2178_p9 }
 0x5e9   : > { %p1725_p4 = por %p1724_p3, %p1723_p2 }
 0x5ea   : > { %p1719_p12 = pneg %p1718_p10 }
 0x5ec   : > { %p1726_p7 = pnand %p1725_p4, %p1719_p12 }
 0x621   : > { %v1057_v9 = vpop.permute.xlu0 %1056 }
 0x622   : > { %v1067_v12 = vsel %vm612_vm2, %v713_v54, %v1057_v9 }
 0x629   : > { %v1061_v11 = vpop.permute.xlu1 %1060 }
 0x62a   : > { %v1069_v13 = vsel %vm1068_vm4, %v1067_v12, %v1061_v11 }
 0x655   : > { %v1065_v14 = vpop.permute.xlu0 %1064 }
 0x656   : > { %v1071_v15 = vsel %vm1070_vm5, %v1069_v13, %v1065_v14 }
 0x657   : > { %v1072_v16 = vpack.c.bf16 %v1071_v15, %v1071_v15 }
 0x659   : > { %1074 = vst.msk [vmem:[#allocation2] sm:$0xf] %vm1073_vm6, %v1072_v16 }
 0x660   : > { %v1075_v17 = vld [vmem:[#allocation2] sm:$0xf] }
 0x661   : > { %1571 = vmatmul.mubr.msk.bf16.vlgmr.msra.gmra.mrb[20].mxu1 %vm428_vm0, %v1075_v17 }
 0x662   : > { %1590 = vmatprep.mubr.msk.bf16.mxu1 %vm1789_vm1, %v1788_v10  ;;  %1583 = vmatpush3.bf16.msra.mxu1 %v1662_v42 }
 0x663   : > { %1584 = vmatprep.subr.bf16.mxu1 %v1788_v10 }
 0x666   : > { %1585 = vmatpush3.bf16.msra.mxu1 %v1663_v43 }
 0x667   : > { %1586 = vmatprep.subr.bf16.mxu1 %v1788_v10 }
 0x66a   : > { %1587 = vmatpush3.bf16.msra.mxu1 %v1664_v44 }
 0x66b   : > { %1588 = vmatprep.subr.bf16.mxu1 %v1788_v10 }
 0x66e   : > { %1589 = vmatpush3.bf16.msra.mxu1 %v1665_v45 }
 0x734   : > { %v1136_v19 = vpop.f32.mrb[20].mxu1 }
 0x735   : > { %v1137_v20 = vadd.f32 %v1438_v18, %v1136_v19  ;;  %v1572_v21 = vpop.f32.mrb[21].mxu1 }
 0x736   : > { %v1139_v22 = vpop.f32.mrb[22].mxu1 }
 0x737   : > { %v2068_v23 = vadd.f32 %v1137_v20, %v1951_v0  ;;  %v1573_v24 = vpop.f32.mrb[23].mxu1 }
 0x739   : > { %v1145_v25 = vsel %vm428_vm0, %v2068_v23, 0.0 }
 0x73a   : > { %1146 = vadd.xlane.f32.xlu1 %v1145_v25 }
 0x7c7   : > { %v1147_v26 = vpop.xlane.xlu1 %1146 }
 0x7c8   : > { %v1148_v27 = vmul.f32 0.03125, %v1147_v26 }
 0x7ca   : > { %v1149_v28 = vsub.f32 %v2068_v23, %v1148_v27 }
 0x7cc   : > { %v1150_v29 = vmul.f32 %v1149_v28, %v1149_v28 }
 0x7ce   : > { %v1151_v30 = vsel %vm428_vm0, %v1150_v29, 0.0 }
 0x7cf   : > { %1152 = vadd.xlane.f32.xlu0 %v1151_v30 }
 0x85c   : > { %v1153_v0 = vpop.xlane.xlu0 %1152 }
 0x85d   : > { %v1154_v33 = vmul.f32 0.03125, %v1153_v0 }
 0x85f   : > { %v1155_v34 = vadd.f32 1e-05, %v1154_v33 }
 0x861   : > { %1684 = vrsqrt.f32 %v1155_v34 }
 0x86b   : > { %v1685_v35 = vpop.eup %1684 }
 0x86c   : > { %v1157_v37 = vmul.f32 %v1685_v35, %v1149_v28 }
 0x86e   : > { %v1164_v39 = vmul.f32 %v1442_v36, %v1157_v37 }
 0x870   : > { %v1171_v40 = vadd.f32 %v1443_v38, %v1164_v39 }
 0x872   : > { %v1172_v41 = vpack.c.bf16 %v1171_v40, %v1171_v40 }
 0x874   : > { %1579 = vmatmul.mubr.msk.bf16.vlgmr.msra.gmra.mrb[24].mxu0 %vm428_vm0, %v1172_v41 }
 0x947   : > { %v1233_v47 = vpop.f32.mrb[24].mxu0 }
 0x948   : > { %v1234_v48 = vadd.f32 %v1444_v46, %v1233_v47  ;;  %v1580_v49 = vpop.f32.mrb[25].mxu0 }
 0x949   : > { %v1236_v50 = vpop.f32.mrb[26].mxu0 }
 0x94a   : > { %v1240_v51 = vmul.f32 0.70710677, %v1234_v48  ;;  %v1581_v52 = vpop.f32.mrb[27].mxu0  ;;  %v1239_v10 = vmul.f32 0.5, %v1234_v48 }
 0x94c   : > { %1686 = verf.f32 %v1240_v51 }
 0x956   : > { %v1687_v53 = vpop.eup %1686 }
 0x957   : > { %v1242_v54 = vadd.f32 1.0, %v1687_v53 }
 0x959   : > { %v1243_v55 = vmul.f32 %v1242_v54, %v1239_v10 }
 0x95b   : > { %v1244_v56 = vpack.c.bf16 %v1243_v55, %v1243_v55 }
 0x95d   : > { %1591 = vmatmul.mubr.msk.bf16.vlgmr.msra.gmra.mrb[24].mxu1 %vm1284_vm7, %v1244_v56 }
 0xa30   : > { %v1322_v58 = vpop.f32.mrb[24].mxu1 }
 0xa31   : > { %v1323_v59 = vadd.f32 %v1448_v57, %v1322_v58  ;;  %v1592_v60 = vpop.f32.mrb[25].mxu1 }
 0xa32   : > { %v1325_v61 = vpop.f32.mrb[26].mxu1 }
 0xa33   : > { %v1328_v62 = vadd.f32 %v1323_v59, %v2068_v23  ;;  %v1593_v63 = vpop.f32.mrb[27].mxu1 }
 0xa35   : > { %1329 = vst.msk [vmem:[%s419_s26] sm:$0xff] %vm428_vm0, %v1328_v62 }
 0xa36   : > { %1729 = shalt.err (!%p1726_p7)
}
 0xa37   : > { %s1730_s20 = scalar_lea.hbm %s2109_s17, 128  ;;  %s1734_s16 = scalar_lea.hbm %s2164_s12, 256 }
 0xa38   : > { %p1731_p8 = scmp.ne.s32.totalorder %s2109_s17, %s1730_s20  ;;  %p1735_p1 = scmp.lt.u32.totalorder %s2109_s17, %s2164_s12 }
 0xa39   : > { %p1736_p0 = scmp.lt.u32.totalorder %s1734_s16, %s1730_s20  ;;  %p1738_p6 = scmp.lt.u32.totalorder %s1730_s20, %s2109_s17 }
 0xa3a   : > { %p1732_p11 = pnand %p1731_p8, %p2178_p9 }
 0xa3b   : > { %p1737_p5 = por %p1736_p0, %p1735_p1 }
 0xa3c   : > { %p1733_p13 = pneg %p1732_p11 }
 0xa3d   : > { %p1739_p10 = por %p1738_p6, %p1737_p5 }
 0xa3f   : > { %p1740_p12 = pnand %p1739_p10, %p1733_p13 }
 0xa41   : > { %1743 = shalt.err (!%p1740_p12)
}
 0xa42   : > { %1598 = dma.vmem_to_hbm [thread:$0]  (%p2178_p9), %s2111_s18, 128, %s2109_s17, %s1331_s25  }
 0xa43 PF: > { %p1610_p2 = scmp.ge.s32.totalorder %s1782_s24, 2  ;;  %s1356_s19 = sand.u32 1, %s1770_s21  }
 0xa44   : > { %p2179_p3 = scmp.ne.s32.totalorder %s2172_s14, 0  ;;  %s1357_s29 = scalar_lea.sflag [#allocation5], %s1356_s19 }
 0xa46   : > { %p1605_p4 = pnand %p1610_p2, %p2179_p3 }
 0xa48   : > { %1765 = dma.done.wait (!%p1605_p4), %s1357_s29, 128  }
 0xa49   : > { %1767 = vsyncadd (!%p1605_p4), %s1357_s29, 4294967168  ;;  %s2180_s23 = sld [smem:[#allocation9_spill]]  ;;  %s2181_s20 = sld [smem:[#allocation10_spill]] }
 0xa4a   : > { %p23_p7 = scmp.ge.s32.totalorder %s1888_s27, 4   ;;  %s2182_s21 = smov %s1774_s22 }
 0xa4b   : > { %s2185_s24 = smov %s1888_s27 }
 0xa4c   :  { %25 = sbr.rel (!%p23_p7) target bundleno = 4 (0x4), region = 108 }
 0xa4f   : > { %s2183_s22 = smov %s2180_s23  ;;  %s2184_s23 = smov %s2181_s20 }
 0xa53   :  { %1362 = vsyncpa [#allocation4], 1 }
 0xa54   :  { %1364 = vsyncpa [#allocation4 + $0x1], 1 }
 0xa55   :  { %1365 = vsyncpa [#allocation5], 1 }
 0xa56   :  { %1367 = vsyncpa [#allocation5 + $0x1], 1 }

</bundles_post_ra>
